<compile_context>
chip_gen: v6e
topology: v6e:2x2x1
jax: 0.10.0
libtpu: 0.0.40
codegen_flags: <defaults>
</compile_context>

<pallas_src>
import jax
import jax.numpy as jnp
from jax.experimental import pallas as pl
from jax.experimental.pallas import tpu as pltpu

INPUT_SIZE = 4
HIDDEN_SIZE = 10
OUTPUT_SIZE = 3
BN_EPS = 1e-5
DROPOUT_RATE = 0.0  # IrisNet __init__ default; rate 0.0 => identity
# TODO(synk): if dropout_rate > 0 were required in training mode, build the keep
# mask in-kernel with pltpu.prng_seed + pltpu.prng_random_bits.

LANES = 128           # lane width; hidden/output dims are zero-padded to this
GAMMA_ROW = 4
BETA_ROW = 5
B2_ROW = 6
W2_ROW0 = 16          # 8-row aligned start of the padded W2 block
SLAB_ROWS = W2_ROW0 + LANES  # 144 rows total (multiple of 8)


def pack_params(w1, gamma, beta, w2, b2):
    """Pack all parameters into a single pre-padded (144, 128) f32 slab.

    Layout (zeros everywhere else):
      rows 0:4,  cols 0:10  -> W1^T                 (4, 10)
      row  4,    cols 0:10  -> gamma
      row  5,    cols 0:10  -> beta
      row  6,    cols 0:3   -> b2
      rows 16:26, cols 0:3  -> W2^T                 (10, 3)   (rest of the
                               128-row W2 block is zero, so padded hidden
                               lanes contribute nothing to fc2)
    b1 is intentionally NOT packed: training-mode BN cancels it exactly.
    """
    slab = jnp.zeros((SLAB_ROWS, LANES), jnp.float32)
    slab = slab.at[0:INPUT_SIZE, 0:HIDDEN_SIZE].set(w1.T)
    slab = slab.at[GAMMA_ROW, 0:HIDDEN_SIZE].set(gamma)
    slab = slab.at[BETA_ROW, 0:HIDDEN_SIZE].set(beta)
    slab = slab.at[B2_ROW, 0:OUTPUT_SIZE].set(b2)
    slab = slab.at[W2_ROW0:W2_ROW0 + HIDDEN_SIZE, 0:OUTPUT_SIZE].set(w2.T)
    return slab


def iris_kernel(x_ref, p_ref, o_ref):
    x = x_ref[...].astype(jnp.float32)                     # (B, 4)

    # Static slices of the single parameter slab (no extra DMAs).
    w1 = p_ref[0:INPUT_SIZE, :]                            # (4, 128)
    gamma = p_ref[GAMMA_ROW:GAMMA_ROW + 1, :]              # (1, 128)
    beta = p_ref[BETA_ROW:BETA_ROW + 1, :]                 # (1, 128)
    b2 = p_ref[B2_ROW:B2_ROW + 1, :]                       # (1, 128)
    w2 = p_ref[W2_ROW0:W2_ROW0 + LANES, :]                 # (128, 128)

    # fc1 (b1 omitted: exactly cancelled by BN's batch-mean subtraction).
    h = jnp.dot(x, w1, preferred_element_type=jnp.float32)  # (B, 128)

    # BatchNorm1d training-mode forward: one-sweep batch statistics.
    inv_b = 1.0 / h.shape[0]
    s1 = jnp.sum(h, axis=0, keepdims=True)                  # (1, 128)
    s2 = jnp.sum(h * h, axis=0, keepdims=True)               # (1, 128)
    mean = s1 * inv_b
    var = jnp.maximum(s2 * inv_b - mean * mean, 0.0)         # biased variance
    scale = gamma * jax.lax.rsqrt(var + BN_EPS)               # (1, 128)
    shift = beta - mean * scale                               # (1, 128)
    # gamma/beta are zero-padded beyond lane 10, so padded lanes stay exactly 0.

    # Fused BN affine + ReLU (single full-tile pass).
    h = jnp.maximum(h * scale + shift, 0.0)

    # Dropout(p=0.0) -> identity.

    # fc2: padded hidden lanes hit zero rows of w2; lane-dense (B, 128) store.
    out = jnp.dot(h, w2, preferred_element_type=jnp.float32) + b2
    o_ref[...] = out.astype(o_ref.dtype)


def iris_forward(x, param_slab):
    B = x.shape[0]
    vmem_spec = pl.BlockSpec(memory_space=pltpu.MemorySpace.VMEM)
    out_pad = pl.pallas_call(
        iris_kernel,
        out_shape=jax.ShapeDtypeStruct((B, LANES), jnp.float32),
        in_specs=[vmem_spec, vmem_spec],
        out_specs=vmem_spec,
    )(x, param_slab)
    return out_pad[:, :OUTPUT_SIZE]


def init_params(key):
    """Deterministic init mimicking PyTorch nn.Linear / nn.BatchNorm1d defaults."""
    k1, k2, k3, k4 = jax.random.split(key, 4)
    bound1 = 1.0 / jnp.sqrt(INPUT_SIZE)
    w1 = jax.random.uniform(k1, (HIDDEN_SIZE, INPUT_SIZE), jnp.float32, -bound1, bound1)
    b1 = jax.random.uniform(k2, (HIDDEN_SIZE,), jnp.float32, -bound1, bound1)
    bound2 = 1.0 / jnp.sqrt(HIDDEN_SIZE)
    w2 = jax.random.uniform(k3, (OUTPUT_SIZE, HIDDEN_SIZE), jnp.float32, -bound2, bound2)
    b2 = jax.random.uniform(k4, (OUTPUT_SIZE,), jnp.float32, -bound2, bound2)
    gamma = jnp.ones((HIDDEN_SIZE,), jnp.float32)
    beta = jnp.zeros((HIDDEN_SIZE,), jnp.float32)
    return w1, b1, gamma, beta, w2, b2


def reference_forward(x, w1, b1, gamma, beta, w2, b2):
    """Pure-JAX reference matching the PyTorch module (b1 included here; BN
    training-mode batch stats cancel it, which the kernel exploits)."""
    h = x @ w1.T + b1
    mean = jnp.mean(h, axis=0, keepdims=True)
    var = jnp.mean((h - mean) ** 2, axis=0, keepdims=True)
    h = gamma * (h - mean) / jnp.sqrt(var + BN_EPS) + beta
    h = jnp.maximum(h, 0.0)
    return h @ w2.T + b2


if __name__ == "__main__":
    key = jax.random.PRNGKey(0)
    kx, kp = jax.random.split(key)

    B = 8  # NOTE: training-mode BatchNorm1d requires B > 1 (PyTorch errors at B=1)
    x = jax.random.normal(kx, (B, INPUT_SIZE), jnp.float32)

    w1, b1, gamma, beta, w2, b2 = init_params(kp)
    slab = pack_params(w1, gamma, beta, w2, b2)

    out = iris_forward(x, slab)
    out = jax.block_until_ready(out)

    ref = reference_forward(x, w1, b1, gamma, beta, w2, b2)
    assert out.shape == (B, OUTPUT_SIZE)
    assert jnp.allclose(out, ref, atol=2e-5, rtol=1e-5), "mismatch vs pure-JAX reference"

    print("KERNEL_OK")
</pallas_src>

<mosaic_0001>
module attributes {stable_mosaic.version = 11 : i64} {
  func.func @iris_kernel(%arg0: memref<8x4xf32, #tpu.memory_space<vmem>>, %arg1: memref<144x128xf32, #tpu.memory_space<vmem>>, %arg2: memref<8x128xf32, #tpu.memory_space<vmem>>) attributes {dimension_semantics = [], scalar_prefetch = 0 : i64, scratch_operands = 0 : i64, tpu.core_type = #tpu.core_type<tc>} {
    %c0 = arith.constant 0 : index
    %c0_0 = arith.constant 0 : index
    %0 = vector.load %arg0[%c0, %c0_0] : memref<8x4xf32, #tpu.memory_space<vmem>>, vector<8x4xf32>
    %c0_1 = arith.constant 0 : index
    %c0_2 = arith.constant 0 : index
    %1 = vector.load %arg1[%c0_1, %c0_2] : memref<144x128xf32, #tpu.memory_space<vmem>>, vector<4x128xf32>
    %c4 = arith.constant 4 : index
    %c0_3 = arith.constant 0 : index
    %2 = vector.load %arg1[%c4, %c0_3] : memref<144x128xf32, #tpu.memory_space<vmem>>, vector<1x128xf32>
    %c5 = arith.constant 5 : index
    %c0_4 = arith.constant 0 : index
    %3 = vector.load %arg1[%c5, %c0_4] : memref<144x128xf32, #tpu.memory_space<vmem>>, vector<1x128xf32>
    %c6 = arith.constant 6 : index
    %c0_5 = arith.constant 0 : index
    %4 = vector.load %arg1[%c6, %c0_5] : memref<144x128xf32, #tpu.memory_space<vmem>>, vector<1x128xf32>
    %c16 = arith.constant 16 : index
    %c0_6 = arith.constant 0 : index
    %5 = vector.load %arg1[%c16, %c0_6] : memref<144x128xf32, #tpu.memory_space<vmem>>, vector<128x128xf32>
    %cst = arith.constant dense<0.000000e+00> : vector<8x128xf32>
    %6 = tpu.matmul %0, %1, %cst {dimension_numbers = #tpu.dot_dimension_numbers<[1], [0], [0], [1], [0, 0, 1, 1], [], []>} : vector<8x4xf32>, vector<4x128xf32>, vector<8x128xf32> -> vector<8x128xf32>
    %cst_7 = arith.constant dense<0.000000e+00> : vector<128xf32>
    %7 = vector.multi_reduction <add>, %6, %cst_7 [0] : vector<8x128xf32> to vector<128xf32>
    %8 = vector.shape_cast %7 : vector<128xf32> to vector<1x128xf32>
    %9 = arith.mulf %6, %6 : vector<8x128xf32>
    %cst_8 = arith.constant dense<0.000000e+00> : vector<128xf32>
    %10 = vector.multi_reduction <add>, %9, %cst_8 [0] : vector<8x128xf32> to vector<128xf32>
    %11 = vector.shape_cast %10 : vector<128xf32> to vector<1x128xf32>
    %cst_9 = arith.constant 1.250000e-01 : f32
    %12 = vector.broadcast %cst_9 : f32 to vector<1x128xf32>
    %13 = arith.mulf %8, %12 : vector<1x128xf32>
    %cst_10 = arith.constant 1.250000e-01 : f32
    %14 = vector.broadcast %cst_10 : f32 to vector<1x128xf32>
    %15 = arith.mulf %11, %14 : vector<1x128xf32>
    %16 = arith.mulf %13, %13 : vector<1x128xf32>
    %17 = arith.subf %15, %16 : vector<1x128xf32>
    %cst_11 = arith.constant 0.000000e+00 : f32
    %18 = vector.broadcast %cst_11 : f32 to vector<1x128xf32>
    %19 = arith.maximumf %17, %18 : vector<1x128xf32>
    %cst_12 = arith.constant 9.99999974E-6 : f32
    %20 = vector.broadcast %cst_12 : f32 to vector<1x128xf32>
    %21 = arith.addf %19, %20 : vector<1x128xf32>
    %22 = math.rsqrt %21 : vector<1x128xf32>
    %23 = arith.mulf %2, %22 : vector<1x128xf32>
    %24 = arith.mulf %13, %23 : vector<1x128xf32>
    %25 = arith.subf %3, %24 : vector<1x128xf32>
    %26 = vector.broadcast %23 : vector<1x128xf32> to vector<8x128xf32>
    %27 = arith.mulf %6, %26 : vector<8x128xf32>
    %28 = vector.broadcast %25 : vector<1x128xf32> to vector<8x128xf32>
    %29 = arith.addf %27, %28 : vector<8x128xf32>
    %cst_13 = arith.constant 0.000000e+00 : f32
    %30 = vector.broadcast %cst_13 : f32 to vector<8x128xf32>
    %31 = arith.maximumf %29, %30 : vector<8x128xf32>
    %cst_14 = arith.constant dense<0.000000e+00> : vector<8x128xf32>
    %32 = tpu.matmul %31, %5, %cst_14 {dimension_numbers = #tpu.dot_dimension_numbers<[1], [0], [0], [1], [0, 0, 1, 1], [], []>} : vector<8x128xf32>, vector<128x128xf32>, vector<8x128xf32> -> vector<8x128xf32>
    %33 = vector.broadcast %4 : vector<1x128xf32> to vector<8x128xf32>
    %34 = arith.addf %32, %33 : vector<8x128xf32>
    %c0_15 = arith.constant 0 : index
    %c0_16 = arith.constant 0 : index
    %35 = vector.load %arg2[%c0_15, %c0_16] : memref<8x128xf32, #tpu.memory_space<vmem>>, vector<8x128xf32>
    tpu.vector_store %arg2[%c0_15, %c0_16], %34 {strides = array<i32>} : memref<8x128xf32, #tpu.memory_space<vmem>>, vector<8x128xf32>,
    return
  }
}

</mosaic_0001>

<bundles_post_ra>
// kernel: tpu_custom_call.1
= control target key start
LH: loop header
LB: loop body
LE: loop exit
PB: predicated region body
PF: predicated region fallthrough
CT: control target
= control target key end

     0   :  { %7 = vsyncpa [#allocation3], 0  ;;  %s393_s0 = inlined_call_operand.vmem [shape: f32[8,4], index: 0, kind: input, shape index: {}]   ;;  %s394_s1 = inlined_call_operand.hbm [shape: f32[144,128], index: 1, kind: input, shape index: {}]   ;;  %s395_s2 = inlined_call_operand.hbm [shape: f32[8,128], index: 2, kind: output, shape index: {}]  }
   0x1   :  { %8 = vsyncpa [#allocation4], 0  ;;  %s363_s9 = smov [#allocation2]  }
   0x2   :  { %s16_s10 = sshll.u32 %s363_s9, 4  ;;  %s17_s10 = int_to_ptr.vmem [resolvable:$true] %s16_s10 }
   0x3   :  { %s327_s11 = scalar_lea.vmem %s17_s10, 2304  ;;  %p332_p1 = scmp.lt.s32.totalorder %s17_s10, %s17_s10 }
   0x4   :  { %p328_p0 = scmp.ne.s32.totalorder %s17_s10, %s327_s11  ;;  %p333_p2 = scmp.lt.s32.totalorder %s327_s11, %s327_s11 }
   0x6   :  { %p334_p3 = por %p333_p2, %p332_p1 }
   0x8   :  { %p335_p4 = pnand %p334_p3, %p328_p0 }
   0xa   :  { %338 = shalt.err (!%p335_p4)
}
   0xb   :  { %s364_s12 = smov 128   ;;  %s365_s13 = smov 8  }
   0xc   :  { %22 = dma.hbm_to_vmem [thread:$0]  %s394_s1, 2304, %s17_s10, [#allocation3], %s364_s12, %s364_s12, %s365_s13  }
   0xd   :  { %359 = dma.done.wait [#allocation3], 2304  }
   0xe   :  { %360 = vsyncadd [#allocation3], 4294964992  ;;  %v366_v0 = vmov 0.0   ;;  %vm367_vm0 = vmmov 0   ;;  %vm51_vm1 = vcmask 1043456   ;;  %vm47_vm2 = vcmask 31744  }
   0xf   :  { %271 = vmatprep.subr.mxu0 %v366_v0  ;;  %273 = vmatprep.mubr.msk.f32.mxu0 %vm367_vm0, %v366_v0  ;;  %v27_v1 = vld [vmem:[#allocation2] sm:$0xf]  ;;  %v46_v3 = vld [vmem:[#allocation2 + $0x88] sm:$0xff]  ;;  %v44_v5 = vld [vmem:[#allocation2 + $0x78] sm:$0xff]  ;;  %v148_v40 = vlaneseq }
  0x10   :  { %276 = vmatprep.subr.mxu1 %v366_v0  ;;  %308 = vmatprep.mubr.msk.f32.mxu1 %vm367_vm0, %v366_v0  ;;  %v26_v2 = vld [vmem:[%s393_s0] sm:$0xff]  ;;  %v43_v6 = vld [vmem:[#allocation2 + $0x70] sm:$0xff]  ;;  %v42_v7 = vld [vmem:[#allocation2 + $0x68] sm:$0xff]  ;;  %s368_s0 = smov [#allocation5]  }
  0x11   :  { %272 = vmatpush3.msk.msra.mxu0 %vm51_vm1, %v27_v1  ;;  %277 = vmatpush3.msra.mxu1 %v46_v3  ;;  %v45_v4 = vld [vmem:[#allocation2 + $0x80] sm:$0xff]  ;;  %v40_v9 = vld [vmem:[#allocation2 + $0x58] sm:$0xff]  ;;  %v39_v10 = vld [vmem:[#allocation2 + $0x50] sm:$0xff]  ;;  %v149_v41 = vshrl.u32 %v148_v40, 7  ;;  %s240_s1 = sshll.u32 %s368_s0, 4  ;;  %s241_s1 = int_to_ptr.vmem [resolvable:$true] %s240_s1 }
  0x12   :  { %274 = vmatmul.mubr.msk.f32.vlgmr.msra.gmra.mxu0 %vm47_vm2, %v26_v2  ;;  %278 = vmatprep.subr.mxu1 %v366_v0  ;;  %v41_v8 = vld [vmem:[#allocation2 + $0x60] sm:$0xff]  ;;  %v38_v11 = vld [vmem:[#allocation2 + $0x48] sm:$0xff]  ;;  %v36_v13 = vld [vmem:[#allocation2 + $0x38] sm:$0xff]  ;;  %s339_s18 = scalar_lea.vmem %s241_s1, 128  ;;  %p344_p6 = scmp.lt.s32.totalorder %s241_s1, %s241_s1 }
  0x13   :  { %279 = vmatpush3.msra.mxu1 %v45_v4  ;;  %v37_v12 = vld [vmem:[#allocation2 + $0x40] sm:$0xff]  ;;  %v35_v14 = vld [vmem:[#allocation2 + $0x30] sm:$0xff]  ;;  %v34_v15 = vld [vmem:[#allocation2 + $0x28] sm:$0xff]  ;;  %v150_v43 = vsub.s32 0, %v149_v41  ;;  %p340_p5 = scmp.ne.s32.totalorder %s241_s1, %s339_s18  ;;  %p345_p7 = scmp.lt.s32.totalorder %s339_s18, %s339_s18 }
  0x14   :  { %280 = vmatprep.subr.mxu1 %v366_v0  ;;  %v33_v16 = vld [vmem:[#allocation2 + $0x20] sm:$0xff]  ;;  %v32_v17 = vld [vmem:[#allocation2 + $0x18] sm:$0xff]  ;;  %v31_v18 = vld [vmem:[#allocation2 + $0x10] sm:$0xff] }
  0x15   :  { %281 = vmatpush3.msra.mxu1 %v44_v5  ;;  %v28_v42 = vld [vmem:[#allocation2 + $0x4] sm:$0x1]  ;;  %v29_v46 = vld [vmem:[#allocation2 + $0x5] sm:$0x1]  ;;  %v251_v54 = vld [vmem:[#allocation2 + $0x6] ss:$0 sm:$0xff]  ;;  %p346_p8 = por %p345_p7, %p344_p6 }
  0x16   :  { %282 = vmatprep.subr.mxu1 %v366_v0 }
  0x17   :  { %283 = vmatpush3.msra.mxu1 %v43_v6  ;;  %p347_p9 = pnand %p346_p8, %p340_p5 }
  0x18   :  { %284 = vmatprep.subr.mxu1 %v366_v0 }
  0x19   :  { %285 = vmatpush3.msra.mxu1 %v42_v7 }
  0x1a   :  { %286 = vmatprep.subr.mxu1 %v366_v0 }
  0x1b   :  { %287 = vmatpush3.msra.mxu1 %v41_v8 }
  0x1c   :  { %288 = vmatprep.subr.mxu1 %v366_v0 }
  0x1d   :  { %289 = vmatpush3.msra.mxu1 %v40_v9 }
  0x1e   :  { %290 = vmatprep.subr.mxu1 %v366_v0 }
  0x1f   :  { %291 = vmatpush3.msra.mxu1 %v39_v10 }
  0x20   :  { %292 = vmatprep.subr.mxu1 %v366_v0 }
  0x21   :  { %293 = vmatpush3.msra.mxu1 %v38_v11 }
  0x22   :  { %294 = vmatprep.subr.mxu1 %v366_v0 }
  0x23   :  { %295 = vmatpush3.msra.mxu1 %v37_v12 }
  0x24   :  { %296 = vmatprep.subr.mxu1 %v366_v0 }
  0x25   :  { %297 = vmatpush3.msra.mxu1 %v36_v13 }
  0x26   :  { %298 = vmatprep.subr.mxu1 %v366_v0 }
  0x27   :  { %299 = vmatpush3.msra.mxu1 %v35_v14 }
  0x28   :  { %300 = vmatprep.subr.mxu1 %v366_v0 }
  0x29   :  { %301 = vmatpush3.msra.mxu1 %v34_v15 }
  0x2a   :  { %302 = vmatprep.subr.mxu1 %v366_v0 }
  0x2b   :  { %303 = vmatpush3.msra.mxu1 %v33_v16 }
  0x2c   :  { %304 = vmatprep.subr.mxu1 %v366_v0 }
  0x2d   :  { %305 = vmatpush3.msra.mxu1 %v32_v17 }
  0x2e   :  { %306 = vmatprep.subr.mxu1 %v366_v0 }
  0x2f   :  { %307 = vmatpush3.msra.mxu1 %v31_v18 }
  0xd2   :  { %v121_v19 = vpop.f32.mrf.mxu0 }
  0xd3   :  { %v125_v20 = vrot.slane %v121_v19, 4  ;;  %v131_v21 = vmul.f32 %v121_v19, %v121_v19 }
  0xd4   :  { %v275_v22 = vpop.f32.mrf.mxu0 }
  0xd5   :  { %v126_v23 = vadd.f32 %v125_v20, %v121_v19  ;;  %v132_v24 = vrot.slane %v131_v21, 4 }
  0xd7   :  { %v127_v25 = vrot.slane %v126_v23, 2  ;;  %v133_v26 = vadd.f32 %v132_v24, %v131_v21 }
  0xd9   :  { %v128_v27 = vadd.f32 %v127_v25, %v126_v23  ;;  %v134_v28 = vrot.slane %v133_v26, 2 }
  0xdb   :  { %v129_v29 = vrot.slane %v128_v27, 1  ;;  %v135_v30 = vadd.f32 %v134_v28, %v133_v26 }
  0xdd   :  { %v130_v31 = vadd.f32 %v129_v29, %v128_v27  ;;  %v136_v32 = vrot.slane %v135_v30, 1 }
  0xdf   :  { %v137_v33 = vadd.f32 %v136_v32, %v135_v30  ;;  %v138_v34 = vmul.f32 0.125, %v130_v31 }
  0xe1   :  { %v139_v35 = vmul.f32 0.125, %v137_v33  ;;  %v140_v36 = vmul.f32 %v138_v34, %v138_v34 }
  0xe3   :  { %v141_v37 = vsub.f32 %v139_v35, %v140_v36 }
  0xe5   :  { %v142_v38 = vmax.f32 %v141_v37, 0.0 }
  0xe7   :  { %v143_v39 = vadd.f32 1e-05, %v142_v38 }
  0xe9   :  { %317 = vrsqrt.f32 %v143_v39 }
  0xf6   :  { %v318_v44 = vpop.eup %317 }
  0xf7   :  { %v145_v45 = vmul.f32 %v318_v44, %v28_v42 }
  0xf9   :  { %v151_v47 = vrot.slane %v145_v45, %v150_v43  ;;  %v146_v48 = vmul.f32 %v145_v45, %v138_v34 }
  0xfb   :  { %v147_v49 = vsub.f32 %v29_v46, %v146_v48  ;;  %v152_v50 = vmul.f32 %v151_v47, %v121_v19 }
  0xfd   :  { %v156_v51 = vrot.slane %v147_v49, %v150_v43 }
  0xff   :  { %v157_v52 = vadd.f32 %v156_v51, %v152_v50 }
 0x101   :  { %v158_v53 = vmax.f32 %v157_v52, 0.0 }
 0x103   :  { %309 = vmatmul.mubr.f32.vlgmr.msra.gmra.mxu1 %v158_v53 }
 0x1c3   :  { %v229_v55 = vpop.f32.mrf.mxu1 }
 0x1c4   :  { %v230_v56 = vadd.f32 %v251_v54, %v229_v55 }
 0x1c5   :  { %v310_v57 = vpop.f32.mrf.mxu1 }
 0x1c6   :  { %233 = vst [vmem:[#allocation5] sm:$0xff] %v230_v56 }
 0x1c7   :  { %350 = shalt.err (!%p347_p9)
}
 0x1c8   :  { %243 = dma.vmem_to_hbm [thread:$0]  %s241_s1, 128, %s395_s2, [#allocation4]  }
 0x1c9   :  { %361 = dma.done.wait [#allocation4], 128  }
 0x1ca   :  { %362 = vsyncadd [#allocation4], 4294967168 }
 0x1cb   :  { %247 = vsyncpa [#allocation3], 1 }
 0x1cc   :  { %248 = vsyncpa [#allocation4], 1 }

</bundles_post_ra>
